<compile_context>
chip_gen: v6e
topology: v6e:2x2x1
jax: 0.10.0
libtpu: 0.0.40
codegen_flags: <defaults>
</compile_context>

<pallas_src>
import numpy as np
import jax
import jax.numpy as jnp
from jax.experimental import pallas as pl
from jax.experimental.pallas import tpu as pltpu

EPS = 1e-5
GROWTH = 32
BN_SIZE = 4
BLOCK_CONFIG = (6, 12, 48, 32)          # densenet201
NUM_INIT_FEATURES = 64
NODES = (1, 2)                          # classifier: 1920 -> 1 -> 2


def _ru(x, m):
    return (x + m - 1) // m * m


# ------------------- fused BN+ReLU + tiled MXU matmul kernel ------------------

def _make_mm_kernel(pro, epi):
    """out = [epilogue BN+ReLU]( [prologue BN+ReLU](A) @ W ), K-accumulated."""
    def kernel(*refs):
        i = 0
        if pro:
            si_ref, bi_ref = refs[i], refs[i + 1]; i += 2
        if epi:
            so_ref, bo_ref = refs[i], refs[i + 1]; i += 2
        a_ref, w_ref, o_ref, acc_ref = refs[i], refs[i + 1], refs[i + 2], refs[i + 3]

        k = pl.program_id(2)

        @pl.when(k == 0)
        def _init():
            acc_ref[...] = jnp.zeros_like(acc_ref)

        a = a_ref[...]
        if pro:   # folded eval-mode BN + ReLU on input channels (VPU, under MXU)
            a = jnp.maximum(a.astype(jnp.float32) * si_ref[...] + bi_ref[...],
                            0.0).astype(jnp.bfloat16)
        acc_ref[...] += jnp.dot(a, w_ref[...], preferred_element_type=jnp.float32)

        @pl.when(k == pl.num_programs(2) - 1)
        def _done():
            r = acc_ref[...]
            if epi:  # folded BN + ReLU on output channels
                r = jnp.maximum(r * so_ref[...] + bo_ref[...], 0.0)
            o_ref[...] = r.astype(o_ref.dtype)

    return kernel


def _pick_tk(Kp):
    """Largest K tile <= 512 that exactly divides Kp (Kp is a 128-multiple)."""
    if Kp <= 512:
        return Kp
    q = Kp // 128
    for d in (4, 3, 2):
        if q % d == 0:
            return 128 * d
    return 128


def fused_matmul(a, w, si=None, bi=None, so=None, bo=None, *,
                 pro=False, epi=False, n_out=None):
    """a: (M, K) activations; w: (Kp, Np) bf16 weight, pre-padded at init.
    si/bi: (1, Kp) input-channel scale/shift;  so/bo: (1, Np) output-channel.
    Returns (M, n_out) bf16."""
    M, K = a.shape
    Kp, Np = w.shape
    if M >= 256:
        tm, Mp = 256, _ru(M, 256)
    else:
        Mp = _ru(M, 16)
        tm = Mp
    tn = 256 if Np % 256 == 0 else 128
    tk = _pick_tk(Kp)

    a = a.astype(jnp.bfloat16)
    if (Mp, Kp) != (M, K):
        a = jnp.pad(a, ((0, Mp - M), (0, Kp - K)))

    in_specs, args = [], []
    if pro:
        in_specs += [pl.BlockSpec((1, tk), lambda i, j, k: (0, k)),
                     pl.BlockSpec((1, tk), lambda i, j, k: (0, k))]
        args += [si, bi]
    if epi:
        in_specs += [pl.BlockSpec((1, tn), lambda i, j, k: (0, j)),
                     pl.BlockSpec((1, tn), lambda i, j, k: (0, j))]
        args += [so, bo]
    in_specs += [pl.BlockSpec((tm, tk), lambda i, j, k: (i, k)),
                 pl.BlockSpec((tk, tn), lambda i, j, k: (k, j))]
    args += [a, w]

    out = pl.pallas_call(
        _make_mm_kernel(pro, epi),
        out_shape=jax.ShapeDtypeStruct((Mp, Np), jnp.bfloat16),
        grid=(Mp // tm, Np // tn, Kp // tk),
        in_specs=in_specs,
        out_specs=pl.BlockSpec((tm, tn), lambda i, j, k: (i, j)),
        scratch_shapes=[pltpu.VMEM((tm, tn), jnp.float32)],
        compiler_params=pltpu.CompilerParams(
            dimension_semantics=("parallel", "parallel", "arbitrary"),
            vmem_limit_bytes=48 * 1024 * 1024),
    )(*args)

    nv = Np if n_out is None else n_out
    if Mp == M and nv == Np:
        return out
    return out[:M, :nv]


# ------------------------------- JAX glue ops ---------------------------------

def im2col(x, kh, kw, stride, pad):
    """x: (N,H,W,C) -> (N,Ho,Wo,kh*kw*C), patch ordering (kh, kw, C)."""
    N, H, W, C = x.shape
    xp = jnp.pad(x, ((0, 0), (pad, pad), (pad, pad), (0, 0)))
    Ho = (H + 2 * pad - kh) // stride + 1
    Wo = (W + 2 * pad - kw) // stride + 1
    cols = []
    for i in range(kh):
        for j in range(kw):
            cols.append(xp[:, i:i + stride * Ho:stride,
                           j:j + stride * Wo:stride, :])
    out = jnp.stack(cols, axis=3)
    return out.reshape(N, Ho, Wo, kh * kw * C)


def max_pool(x, k, stride, pad):
    N, H, W, C = x.shape
    xp = jnp.pad(x, ((0, 0), (pad, pad), (pad, pad), (0, 0)),
                 constant_values=-jnp.inf)
    Ho = (H + 2 * pad - k) // stride + 1
    Wo = (W + 2 * pad - k) // stride + 1
    vals = []
    for i in range(k):
        for j in range(k):
            vals.append(xp[:, i:i + stride * Ho:stride,
                           j:j + stride * Wo:stride, :])
    return jnp.max(jnp.stack(vals, axis=0), axis=0)


def avg_pool2(x):   # 2x2 stride-2 (even spatial dims, as in DenseNet)
    N, H, W, C = x.shape
    return x.reshape(N, H // 2, 2, W // 2, 2, C).mean(axis=(2, 4))


# -------------------------------- parameters ----------------------------------

def _he(rng, shape, fan_in):
    return jnp.asarray(rng.standard_normal(shape) * np.sqrt(2.0 / fan_in),
                       dtype=jnp.float32)


def _pad_w(w):                       # (K, N) f32 -> (Kp, Np) bf16, once at init
    K, N = w.shape
    return jnp.pad(w, ((0, _ru(K, 128) - K), (0, _ru(N, 128) - N))
                   ).astype(jnp.bfloat16)


def _pad_v(v, L):                    # (C,) f32 -> (1, L) f32
    return jnp.pad(v, (0, L - v.shape[0])).reshape(1, L).astype(jnp.float32)


def _bn_folded(c):
    # gamma=1, beta=0, running_mean=0, running_var=1  (deterministic eval stats)
    scale = jnp.full((c,), 1.0 / np.sqrt(1.0 + EPS), dtype=jnp.float32)
    bias = jnp.zeros((c,), dtype=jnp.float32)
    return scale, bias


def init_params(seed=0, nodes=NODES):
    rng = np.random.default_rng(seed)
    p = {}
    mid = BN_SIZE * GROWTH

    w0 = _he(rng, (7, 7, 3, NUM_INIT_FEATURES), 7 * 7 * 3)
    p['conv0_w'] = _pad_w(w0.reshape(7 * 7 * 3, NUM_INIT_FEATURES))
    s0, b0 = _bn_folded(NUM_INIT_FEATURES)
    p['norm0_s'] = _pad_v(s0, _ru(NUM_INIT_FEATURES, 128))
    p['norm0_b'] = _pad_v(b0, _ru(NUM_INIT_FEATURES, 128))

    c = NUM_INIT_FEATURES
    blocks, transitions = [], []
    for bi, nlayers in enumerate(BLOCK_CONFIG):
        layers = []
        for li in range(nlayers):
            cin = c + li * GROWTH
            cinp = _ru(cin, 128)
            s1, b1 = _bn_folded(cin)
            s2, b2 = _bn_folded(mid)
            w1 = _he(rng, (cin, mid), cin)                       # 1x1 conv
            w2 = _he(rng, (3, 3, mid, GROWTH), 9 * mid)          # 3x3 conv
            layers.append({
                's1': _pad_v(s1, cinp), 'b1': _pad_v(b1, cinp),
                'w1': _pad_w(w1),                                # (cinp, 128)
                's2': _pad_v(s2, mid), 'b2': _pad_v(b2, mid),
                'w2': _pad_w(w2.reshape(9 * mid, GROWTH)),       # (1152, 128)
            })
        blocks.append(layers)
        c += nlayers * GROWTH
        if bi != len(BLOCK_CONFIG) - 1:
            st, bt = _bn_folded(c)
            cp = _ru(c, 128)
            transitions.append({'s': _pad_v(st, cp), 'b': _pad_v(bt, cp),
                                'w': _pad_w(_he(rng, (c, c // 2), c))})
            c //= 2
    p['blocks'] = blocks
    p['transitions'] = transitions

    s5, b5 = _bn_folded(c)                                       # c == 1920
    p['norm5_s'], p['norm5_b'] = s5, b5
    n0 = nodes[0]
    p['fc1_w'] = jnp.asarray(rng.standard_normal((c, n0)) / np.sqrt(c),
                             dtype=jnp.float32)
    p['fc1_b'] = jnp.asarray(rng.standard_normal((n0,)) / np.sqrt(c),
                             dtype=jnp.float32)
    if len(nodes) == 2:
        n1 = nodes[1]
        p['fc2_w'] = jnp.asarray(rng.standard_normal((n0, n1)) / np.sqrt(n0),
                                 dtype=jnp.float32)
        p['fc2_b'] = jnp.asarray(rng.standard_normal((n1,)) / np.sqrt(n0),
                                 dtype=jnp.float32)
    return p


# ---------------------------------- forward -----------------------------------

@jax.jit
def stem_fn(x_nhwc, w0, s0, b0):
    """conv0 (7x7/2) + norm0 + relu0 fused into one matmul, then maxpool."""
    N = x_nhwc.shape[0]
    patches = im2col(x_nhwc.astype(jnp.bfloat16), 7, 7, 2, 3)
    _, Ho, Wo, K = patches.shape
    y = fused_matmul(patches.reshape(N * Ho * Wo, K), w0,
                     so=s0, bo=b0, epi=True, n_out=NUM_INIT_FEATURES)
    return max_pool(y.reshape(N, Ho, Wo, NUM_INIT_FEATURES), 3, 2, 1)


@jax.jit
def dense_layer_fn(x, lp):
    """norm1+relu1+conv1(1x1)+norm2+relu2 in ONE pallas_call; conv2(3x3) in one."""
    N, H, W, C = x.shape
    P = N * H * W
    mid = BN_SIZE * GROWTH
    y = fused_matmul(x.reshape(P, C), lp['w1'],
                     si=lp['s1'], bi=lp['b1'], so=lp['s2'], bo=lp['b2'],
                     pro=True, epi=True, n_out=mid)
    patches = im2col(y.reshape(N, H, W, mid), 3, 3, 1, 1)
    new = fused_matmul(patches.reshape(P, 9 * mid), lp['w2'], n_out=GROWTH)
    return new.reshape(N, H, W, GROWTH)


@jax.jit
def transition_fn(x, tp):
    """norm+relu+conv(1x1) fused into one matmul, then 2x2 avg-pool."""
    N, H, W, C = x.shape
    cout = C // 2
    y = fused_matmul(x.reshape(N * H * W, C), tp['w'],
                     si=tp['s'], bi=tp['b'], pro=True, n_out=cout)
    return avg_pool2(y.reshape(N, H, W, cout))


def densenet_forward(params, x_nchw):
    x = jnp.transpose(x_nchw, (0, 2, 3, 1))                       # NCHW -> NHWC
    x = stem_fn(x, params['conv0_w'], params['norm0_s'], params['norm0_b'])
    for bi in range(len(BLOCK_CONFIG)):
        for lp in params['blocks'][bi]:
            new = dense_layer_fn(x, lp)
            # TODO(synk): write into a preallocated channel slab instead of
            # concatenating the full feature map every layer (O(L^2) traffic).
            x = jnp.concatenate([x, new], axis=-1)
        if bi != len(BLOCK_CONFIG) - 1:
            x = transition_fn(x, params['transitions'][bi])
    # Tiny head in plain JAX: norm5 + relu + global-avg-pool + classifier GEMVs
    # (M=batch=2 — padding to an MXU tile would be pure waste).
    f = x.astype(jnp.float32)
    f = jnp.maximum(f * params['norm5_s'] + params['norm5_b'], 0.0)
    f = f.mean(axis=(1, 2))
    f = f @ params['fc1_w'] + params['fc1_b']
    if 'fc2_w' in params:
        f = f @ params['fc2_w'] + params['fc2_b']
    return f


if __name__ == "__main__":
    params = init_params(seed=0, nodes=NODES)
    key = jax.random.PRNGKey(0)
    x = jax.random.normal(key, (2, 3, 32, 32), dtype=jnp.float32)  # NCHW input
    out = densenet_forward(params, x)
    out = jax.block_until_ready(out)
    assert out.shape == (2, NODES[1]), out.shape
    assert bool(jnp.all(jnp.isfinite(out)))
    print("KERNEL_OK")
</pallas_src>

<mosaic_0001>
module attributes {stable_mosaic.version = 11 : i64} {
  func.func @kernel(%arg0: i32, %arg1: i32, %arg2: i32, %arg3: memref<1x128xf32, #tpu.memory_space<vmem>>, %arg4: memref<1x128xf32, #tpu.memory_space<vmem>>, %arg5: memref<256x256xbf16, #tpu.memory_space<vmem>>, %arg6: memref<256x128xbf16, #tpu.memory_space<vmem>>, %arg7: memref<256x128xbf16, #tpu.memory_space<vmem>>, %arg8: memref<256x128xf32, #tpu.memory_space<vmem>>) attributes {dimension_semantics = [#tpu.dimension_semantics<parallel>, #tpu.dimension_semantics<parallel>, #tpu.dimension_semantics<arbitrary>], iteration_bounds = array<i64: 2, 1, 1>, scalar_prefetch = 0 : i64, scratch_operands = 1 : i64, tpu.core_type = #tpu.core_type<tc>, window_params = [{transform_indices = @transform_0, window_bounds = array<i64: 1, 128>}, {transform_indices = @transform_1, window_bounds = array<i64: 1, 128>}, {transform_indices = @transform_2, window_bounds = array<i64: 256, 256>}, {transform_indices = @transform_3, window_bounds = array<i64: 256, 128>}, {transform_indices = @transform_4, window_bounds = array<i64: 256, 128>}]} {
    %c0_i32 = arith.constant 0 : i32
    %0 = arith.cmpi eq, %arg2, %c0_i32 : i32
    %1 = arith.extui %0 : i1 to i32
    %c0_i32_0 = arith.constant 0 : i32
    %2 = arith.cmpi ne, %1, %c0_i32_0 : i32
    scf.if %2 {
      %cst_10 = arith.constant 0.000000e+00 : f32
      %12 = vector.broadcast %cst_10 : f32 to vector<256x128xf32>
      %c0_11 = arith.constant 0 : index
      %c0_12 = arith.constant 0 : index
      %13 = vector.load %arg8[%c0_11, %c0_12] : memref<256x128xf32, #tpu.memory_space<vmem>>, vector<256x128xf32>
      tpu.vector_store %arg8[%c0_11, %c0_12], %12 {strides = array<i32>} : memref<256x128xf32, #tpu.memory_space<vmem>>, vector<256x128xf32>,
    } else {
    }
    %c0 = arith.constant 0 : index
    %c0_1 = arith.constant 0 : index
    %3 = vector.load %arg5[%c0, %c0_1] : memref<256x256xbf16, #tpu.memory_space<vmem>>, vector<256x256xbf16>
    %c0_2 = arith.constant 0 : index
    %c0_3 = arith.constant 0 : index
    %4 = vector.load %arg8[%c0_2, %c0_3] : memref<256x128xf32, #tpu.memory_space<vmem>>, vector<256x128xf32>
    %c0_4 = arith.constant 0 : index
    %c0_5 = arith.constant 0 : index
    %5 = vector.load %arg6[%c0_4, %c0_5] : memref<256x128xbf16, #tpu.memory_space<vmem>>, vector<256x128xbf16>
    %cst = arith.constant dense<0.000000e+00> : vector<256x128xf32>
    %6 = tpu.matmul %3, %5, %cst {dimension_numbers = #tpu.dot_dimension_numbers<[1], [0], [0], [1], [0, 0, 1, 1], [], []>} : vector<256x256xbf16>, vector<256x128xbf16>, vector<256x128xf32> -> vector<256x128xf32>
    %7 = arith.addf %4, %6 : vector<256x128xf32>
    %c0_6 = arith.constant 0 : index
    %c0_7 = arith.constant 0 : index
    %8 = vector.load %arg8[%c0_6, %c0_7] : memref<256x128xf32, #tpu.memory_space<vmem>>, vector<256x128xf32>
    tpu.vector_store %arg8[%c0_6, %c0_7], %7 {strides = array<i32>} : memref<256x128xf32, #tpu.memory_space<vmem>>, vector<256x128xf32>,
    %c0_i32_8 = arith.constant 0 : i32
    %9 = arith.cmpi eq, %arg2, %c0_i32_8 : i32
    %10 = arith.extui %9 : i1 to i32
    %c0_i32_9 = arith.constant 0 : i32
    %11 = arith.cmpi ne, %10, %c0_i32_9 : i32
    scf.if %11 {
      %c0_10 = arith.constant 0 : index
      %c0_11 = arith.constant 0 : index
      %12 = vector.load %arg8[%c0_10, %c0_11] : memref<256x128xf32, #tpu.memory_space<vmem>>, vector<256x128xf32>
      %c0_12 = arith.constant 0 : index
      %c0_13 = arith.constant 0 : index
      %13 = vector.load %arg3[%c0_12, %c0_13] : memref<1x128xf32, #tpu.memory_space<vmem>>, vector<1x128xf32>
      %14 = vector.broadcast %13 : vector<1x128xf32> to vector<256x128xf32>
      %15 = arith.mulf %12, %14 : vector<256x128xf32>
      %c0_14 = arith.constant 0 : index
      %c0_15 = arith.constant 0 : index
      %16 = vector.load %arg4[%c0_14, %c0_15] : memref<1x128xf32, #tpu.memory_space<vmem>>, vector<1x128xf32>
      %17 = vector.broadcast %16 : vector<1x128xf32> to vector<256x128xf32>
      %18 = arith.addf %15, %17 : vector<256x128xf32>
      %cst_16 = arith.constant 0.000000e+00 : f32
      %19 = vector.broadcast %cst_16 : f32 to vector<256x128xf32>
      %20 = arith.maximumf %18, %19 : vector<256x128xf32>
      %21 = arith.truncf %20 : vector<256x128xf32> to vector<256x128xbf16>
      %c0_17 = arith.constant 0 : index
      %c0_18 = arith.constant 0 : index
      %22 = vector.load %arg7[%c0_17, %c0_18] : memref<256x128xbf16, #tpu.memory_space<vmem>>, vector<256x128xbf16>
      tpu.vector_store %arg7[%c0_17, %c0_18], %21 {strides = array<i32>} : memref<256x128xbf16, #tpu.memory_space<vmem>>, vector<256x128xbf16>,
    } else {
    }
    return
  }
  func.func @transform_0(%arg0: i32, %arg1: i32, %arg2: i32) -> (i32, i32) {
    %c0_i32 = arith.constant 0 : i32
    %c0_i32_0 = arith.constant 0 : i32
    return %c0_i32, %arg1 : i32, i32
  }
  func.func @transform_1(%arg0: i32, %arg1: i32, %arg2: i32) -> (i32, i32) {
    %c0_i32 = arith.constant 0 : i32
    %c0_i32_0 = arith.constant 0 : i32
    return %c0_i32, %arg1 : i32, i32
  }
  func.func @transform_2(%arg0: i32, %arg1: i32, %arg2: i32) -> (i32, i32) {
    %c0_i32 = arith.constant 0 : i32
    return %arg0, %arg2 : i32, i32
  }
  func.func @transform_3(%arg0: i32, %arg1: i32, %arg2: i32) -> (i32, i32) {
    %c0_i32 = arith.constant 0 : i32
    return %arg2, %arg1 : i32, i32
  }
  func.func @transform_4(%arg0: i32, %arg1: i32, %arg2: i32) -> (i32, i32) {
    %c0_i32 = arith.constant 0 : i32
    return %arg0, %arg1 : i32, i32
  }
}

</mosaic_0001>

<bundles_post_ra>
// kernel: stem_fn.1
= control target key start
LH: loop header
LB: loop body
LE: loop exit
PB: predicated region body
PF: predicated region fallthrough
CT: control target
= control target key end

     0   :  { %s1843_s15 = smov 0   ;;  %s1845_s16 = smov 0   ;;  %s2054_s0 = inlined_call_operand.vmem [shape: f32[1,128], index: 0, kind: input, shape index: {}]   ;;  %s2055_s1 = inlined_call_operand.vmem [shape: f32[1,128], index: 1, kind: input, shape index: {}]   ;;  %s2056_s2 = inlined_call_operand.vmem [shape: bf16[512,256], index: 2, kind: input, shape index: {}]   ;;  %s2057_s3 = inlined_call_operand.vmem [shape: bf16[256,128], index: 3, kind: input, shape index: {}]   ;;  %s2058_s4 = inlined_call_operand.vmem [shape: bf16[512,128], index: 4, kind: output, shape index: {}]  }
   0x1   :  { %s1847_s17 = smov 0  }
   0x2 LB: > { %s33_s18 = sadd.s32 1, %s1812_s16  ;;  %p1360_p0 = scmp.ge.s32.totalorder %s1816_s17, 1  ;;  %s1816_s17 = sphi %s1847_s17, %s14_s17   ;;  %s1812_s16 = sphi %s1845_s16, %s2060_s16   ;;  %s1808_s15 = sphi %s1843_s15, %s2059_s15  }
   0x3   : > { %p35_p1 = scmp.ge.s32.totalorder %s33_s18, 2  ;;  %p224_p2 = scmp.lt.s32.totalorder %s1816_s17, 3 }
   0x5   : > { %s2062_s18 = smov (%p35_p1, %s33_s18), 0  ;;  %p225_p3 = pnand %p1360_p0, %p224_p2 }
   0x6   : > { %s1361_s21 = sshll.u32 (!%p225_p3), %s1808_s15, 5 }
   0x7   : > { %228 = sbr.rel (%p225_p3) target bundleno = 311 (0x137), region = 36  ;;  %p280_p4 = scmp.lt.s32.totalorder (!%p225_p3), %s1361_s21, 63 }
   0xc   : > { %v1730_v0 = vld [vmem:[%s2057_s3 + $0x78] sm:$0xff]   ;;  %v1732_v2 = vld [vmem:[%s2057_s3 + $0x70] sm:$0xff]   ;;  %v1734_v4 = vld [vmem:[%s2057_s3 + $0x68] sm:$0xff]   ;;  %s2064_s21 = smov (!%p280_p4, %s1361_s21), 63 }
   0xd   : > { %v1731_v1 = vld [vmem:[%s2057_s3 + $0x38] sm:$0xff]   ;;  %1578 = vmatprep.subr.bf16.mxu0 %v1730_v0  ;;  %1690 = vmatprep.subr.bf16.mxu1 %v1730_v0  ;;  %v1733_v3 = vld [vmem:[%s2057_s3 + $0x30] sm:$0xff]   ;;  %v1735_v5 = vld [vmem:[%s2057_s3 + $0x28] sm:$0xff]   ;;  %s1450_s10 = sshll.u32 %s2064_s21, 3  ;;  %s1365_s12 = sshll.u32 %s2064_s21, 2 }
   0xe   : > { %1579 = vmatpush3.bf16.msra.mxu0 %v1731_v1  ;;  %1698 = vmatpush3.bf16.msra.mxu1 %v1731_v1  ;;  %v1736_v6 = vld [vmem:[%s2057_s3 + $0x60] sm:$0xff]   ;;  %v1738_v8 = vld [vmem:[%s2057_s3 + $0x58] sm:$0xff]   ;;  %s1894_s15 = scalar_lea.vmem %s2056_s2, %s1450_s10  ;;  %v1740_v10 = vld [vmem:[%s2057_s3 + $0x50] sm:$0xff]  }
   0xf   : > { %1580 = vmatprep.subr.bf16.mxu0 %v1732_v2  ;;  %1691 = vmatprep.subr.bf16.mxu1 %v1732_v2  ;;  %v1737_v7 = vld [vmem:[%s2057_s3 + $0x20] sm:$0xff]   ;;  %v1739_v9 = vld [vmem:[%s2057_s3 + $0x18] sm:$0xff]   ;;  %v1741_v13 = vld [vmem:[%s2057_s3 + $0x10] sm:$0xff]  }
  0x10   : > { %v1748_v11 = vld [vmem:[%s1894_s15 + $0x4] ss:$8 sps:$4 sm:$0xff]   ;;  %v1746_v18 = vld [vmem:[%s1894_s15] ss:$8 sps:$4 sm:$0xff]   ;;  %v1752_v20 = vld [vmem:[%s1894_s15 + $0x14] ss:$8 sps:$4 sm:$0xff]  }
  0x11   : > { %v1751_v12 = vld [vmem:[%s1894_s15 + $0x84] ss:$8 sps:$4 sm:$0xff]   ;;  %729 = vmatprep.mubr.bf16.mxu0 %v1748_v11  ;;  %v1749_v19 = vld [vmem:[%s1894_s15 + $0x80] ss:$8 sps:$4 sm:$0xff]   ;;  %v1754_v21 = vld [vmem:[%s1894_s15 + $0x94] ss:$8 sps:$4 sm:$0xff]  }
  0x12   : > { %1581 = vmatpush3.bf16.msra.mxu0 %v1733_v3  ;;  %1699 = vmatpush3.bf16.msra.mxu1 %v1733_v3  ;;  %v1742_v14 = vld [vmem:[%s2057_s3 + $0x48] sm:$0xff]   ;;  %v1744_v16 = vld [vmem:[%s2057_s3 + $0x40] sm:$0xff]   ;;  %v1756_v22 = vld [vmem:[%s1894_s15 + $0x10] ss:$8 sps:$4 sm:$0xff]  }
  0x13   : > { %1582 = vmatprep.subr.bf16.mxu0 %v1734_v4  ;;  %1692 = vmatprep.subr.bf16.mxu1 %v1734_v4  ;;  %v1743_v15 = vld [vmem:[%s2057_s3 + $0x8] sm:$0xff]   ;;  %v1745_v17 = vld [vmem:[%s2057_s3] sm:$0xff]   ;;  %v1757_v23 = vld [vmem:[%s1894_s15 + $0x90] ss:$8 sps:$4 sm:$0xff]  }
  0x14   : > { %793 = vmatprep.mubr.bf16.mxu1 %v1751_v12  ;;  %v1758_v24 = vld [vmem:[%s1894_s15 + $0x24] ss:$8 sps:$4 sm:$0xff]   ;;  %v1762_v26 = vld [vmem:[%s1894_s15 + $0x20] ss:$8 sps:$4 sm:$0xff]   ;;  %v1764_v28 = vld [vmem:[%s1894_s15 + $0x34] ss:$8 sps:$4 sm:$0xff]  }
  0x15   : > { %v1760_v25 = vld [vmem:[%s1894_s15 + $0xa4] ss:$8 sps:$4 sm:$0xff]   ;;  %v1763_v27 = vld [vmem:[%s1894_s15 + $0xa0] ss:$8 sps:$4 sm:$0xff]   ;;  %v1766_v29 = vld [vmem:[%s1894_s15 + $0xb4] ss:$8 sps:$4 sm:$0xff]  }
  0x16   : > { %1583 = vmatpush3.bf16.msra.mxu0 %v1735_v5  ;;  %1700 = vmatpush3.bf16.msra.mxu1 %v1735_v5  ;;  %v1768_v30 = vld [vmem:[%s1894_s15 + $0x30] ss:$8 sps:$4 sm:$0xff]   ;;  %v1770_v32 = vld [vmem:[%s1894_s15 + $0x44] ss:$8 sps:$4 sm:$0xff]   ;;  %v1774_v34 = vld [vmem:[%s1894_s15 + $0x40] ss:$8 sps:$4 sm:$0xff]  }
  0x17   : > { %1584 = vmatprep.subr.bf16.mxu0 %v1736_v6  ;;  %1693 = vmatprep.subr.bf16.mxu1 %v1736_v6  ;;  %v1769_v31 = vld [vmem:[%s1894_s15 + $0xb0] ss:$8 sps:$4 sm:$0xff]   ;;  %v1772_v33 = vld [vmem:[%s1894_s15 + $0xc4] ss:$8 sps:$4 sm:$0xff]   ;;  %v1775_v35 = vld [vmem:[%s1894_s15 + $0xc0] ss:$8 sps:$4 sm:$0xff]  }
  0x18   : > { %v1776_v36 = vld [vmem:[%s1894_s15 + $0x54] ss:$8 sps:$4 sm:$0xff]   ;;  %v1780_v38 = vld [vmem:[%s1894_s15 + $0x50] ss:$8 sps:$4 sm:$0xff]   ;;  %v1782_v40 = vld [vmem:[%s1894_s15 + $0x64] ss:$8 sps:$4 sm:$0xff]  }
  0x19   : > { %v1778_v37 = vld [vmem:[%s1894_s15 + $0xd4] ss:$8 sps:$4 sm:$0xff]   ;;  %v1781_v39 = vld [vmem:[%s1894_s15 + $0xd0] ss:$8 sps:$4 sm:$0xff]   ;;  %v1784_v41 = vld [vmem:[%s1894_s15 + $0xe4] ss:$8 sps:$4 sm:$0xff]  }
  0x1a   : > { %1585 = vmatpush3.bf16.msra.mxu0 %v1737_v7  ;;  %1701 = vmatpush3.bf16.msra.mxu1 %v1737_v7  ;;  %v1786_v42 = vld [vmem:[%s1894_s15 + $0x60] ss:$8 sps:$4 sm:$0xff]   ;;  %v1788_v44 = vld [vmem:[%s1894_s15 + $0x74] ss:$8 sps:$4 sm:$0xff]   ;;  %v1792_v46 = vld [vmem:[%s1894_s15 + $0x70] ss:$8 sps:$4 sm:$0xff]  }
  0x1b   : > { %1586 = vmatprep.subr.bf16.mxu0 %v1738_v8  ;;  %1694 = vmatprep.subr.bf16.mxu1 %v1738_v8  ;;  %v1787_v43 = vld [vmem:[%s1894_s15 + $0xe0] ss:$8 sps:$4 sm:$0xff]   ;;  %v1790_v45 = vld [vmem:[%s1894_s15 + $0xf4] ss:$8 sps:$4 sm:$0xff]   ;;  %v1793_v47 = vld [vmem:[%s1894_s15 + $0xf0] ss:$8 sps:$4 sm:$0xff]   ;;  %s1971_s15 = scalar_lea.vmem %s2058_s4, %s1365_s12 }
  0x1c   : > { %v1952_v51 = vld [vmem:[%s2054_s0] ss:$0 sm:$0xff] }
  0x1d   : > { %v1959_v59 = vld [vmem:[%s2055_s1] ss:$0 sm:$0xff] }
  0x1e   : > { %1587 = vmatpush3.bf16.msra.mxu0 %v1739_v9  ;;  %1702 = vmatpush3.bf16.msra.mxu1 %v1739_v9 }
  0x1f   : > { %1588 = vmatprep.subr.bf16.mxu0 %v1740_v10  ;;  %1695 = vmatprep.subr.bf16.mxu1 %v1740_v10 }
  0x22   : > { %1589 = vmatpush3.bf16.msra.mxu0 %v1741_v13  ;;  %1703 = vmatpush3.bf16.msra.mxu1 %v1741_v13 }
  0x23   : > { %1590 = vmatprep.subr.bf16.mxu0 %v1742_v14  ;;  %1696 = vmatprep.subr.bf16.mxu1 %v1742_v14 }
  0x26   : > { %1591 = vmatpush3.bf16.msra.mxu0 %v1743_v15  ;;  %1704 = vmatpush3.bf16.msra.mxu1 %v1743_v15 }
  0x27   : > { %1592 = vmatprep.subr.bf16.mxu0 %v1744_v16  ;;  %1697 = vmatprep.subr.bf16.mxu1 %v1744_v16 }
  0x2a   : > { %1593 = vmatpush3.bf16.msra.mxu0 %v1745_v17  ;;  %1705 = vmatpush3.bf16.msra.mxu1 %v1745_v17 }
  0x2d   : > { %730 = vmatmul.mubr.bf16.vlgmr.msra.gmra.mxu0 %v1746_v18  ;;  %794 = vmatmul.mubr.bf16.vlgmr.msra.gmra.mxu1 %v1749_v19 }
  0x2e   : > { %737 = vmatprep.mubr.bf16.mxu0 %v1752_v20  ;;  %801 = vmatprep.mubr.bf16.mxu1 %v1754_v21 }
  0x35   : > { %738 = vmatmul.mubr.bf16.gmra.mxu0 %v1756_v22  ;;  %802 = vmatmul.mubr.bf16.gmra.mxu1 %v1757_v23 }
  0x36   : > { %745 = vmatprep.mubr.bf16.mxu0 %v1758_v24  ;;  %809 = vmatprep.mubr.bf16.mxu1 %v1760_v25 }
  0x3d   : > { %746 = vmatmul.mubr.bf16.gmra.mxu0 %v1762_v26  ;;  %810 = vmatmul.mubr.bf16.gmra.mxu1 %v1763_v27 }
  0x3e   : > { %753 = vmatprep.mubr.bf16.mxu0 %v1764_v28  ;;  %817 = vmatprep.mubr.bf16.mxu1 %v1766_v29 }
  0x45   : > { %754 = vmatmul.mubr.bf16.gmra.mxu0 %v1768_v30  ;;  %818 = vmatmul.mubr.bf16.gmra.mxu1 %v1769_v31 }
  0x46   : > { %761 = vmatprep.mubr.bf16.mxu0 %v1770_v32  ;;  %825 = vmatprep.mubr.bf16.mxu1 %v1772_v33 }
  0x4d   : > { %762 = vmatmul.mubr.bf16.gmra.mxu0 %v1774_v34  ;;  %826 = vmatmul.mubr.bf16.gmra.mxu1 %v1775_v35 }
  0x4e   : > { %769 = vmatprep.mubr.bf16.mxu0 %v1776_v36  ;;  %833 = vmatprep.mubr.bf16.mxu1 %v1778_v37 }
  0x55   : > { %770 = vmatmul.mubr.bf16.gmra.mxu0 %v1780_v38  ;;  %834 = vmatmul.mubr.bf16.gmra.mxu1 %v1781_v39 }
  0x56   : > { %777 = vmatprep.mubr.bf16.mxu0 %v1782_v40  ;;  %841 = vmatprep.mubr.bf16.mxu1 %v1784_v41 }
  0x5d   : > { %778 = vmatmul.mubr.bf16.gmra.mxu0 %v1786_v42  ;;  %842 = vmatmul.mubr.bf16.gmra.mxu1 %v1787_v43 }
  0x5e   : > { %785 = vmatprep.mubr.bf16.mxu0 %v1788_v44  ;;  %849 = vmatprep.mubr.bf16.mxu1 %v1790_v45 }
  0x65   : > { %786 = vmatmul.mubr.bf16.gmra.mxu0 %v1792_v46  ;;  %850 = vmatmul.mubr.bf16.gmra.mxu1 %v1793_v47 }
  0xed   : > { %v1594_v48 = vpop.f32.mrf.mxu0  ;;  %v1642_v49 = vpop.f32.mrf.mxu1 }
  0xef   : > { %v1595_v50 = vpop.f32.mrf.mxu0  ;;  %v1643_v52 = vpop.f32.mrf.mxu1 }
  0xf0   : > { %v1596_v53 = vadd.f32 %v1595_v50, %v1594_v48  ;;  %v1644_v54 = vadd.f32 %v1643_v52, %v1642_v49 }
  0xf1   : > { %v1597_v55 = vpop.f32.mrf.mxu0  ;;  %v1645_v56 = vpop.f32.mrf.mxu1 }
  0xf2   : > { %v964_v57 = vmul.f32 %v1596_v53, %v1952_v51  ;;  %v980_v58 = vmul.f32 %v1644_v54, %v1952_v51 }
  0xf3   : > { %v1598_v60 = vpop.f32.mrf.mxu0  ;;  %v1646_v61 = vpop.f32.mrf.mxu1 }
  0xf4   : > { %v1599_v62 = vadd.f32 %v1598_v60, %v1597_v55  ;;  %v1647_v63 = vadd.f32 %v1646_v61, %v1645_v56  ;;  %v1003_v2 = vadd.f32 %v1959_v59, %v964_v57  ;;  %v1019_v3 = vadd.f32 %v1959_v59, %v980_v58 }
  0xf5   : > { %v1600_v0 = vpop.f32.mrf.mxu0  ;;  %v1648_v1 = vpop.f32.mrf.mxu1 }
  0xf6   : > { %v965_v4 = vmul.f32 %v1599_v62, %v1952_v51  ;;  %v981_v5 = vmul.f32 %v1647_v63, %v1952_v51  ;;  %v1035_v14 = vmax.f32 %v1003_v2, 0.0  ;;  %v1051_v15 = vmax.f32 %v1019_v3, 0.0 }
  0xf7   : > { %v1601_v6 = vpop.f32.mrf.mxu0  ;;  %v1649_v7 = vpop.f32.mrf.mxu1 }
  0xf8   : > { %v1004_v8 = vadd.f32 %v1959_v59, %v965_v4  ;;  %v1020_v9 = vadd.f32 %v1959_v59, %v981_v5  ;;  %v1602_v10 = vadd.f32 %v1601_v6, %v1600_v0  ;;  %v1650_v11 = vadd.f32 %v1649_v7, %v1648_v1 }
  0xf9   : > { %v1603_v12 = vpop.f32.mrf.mxu0  ;;  %v1651_v13 = vpop.f32.mrf.mxu1 }
  0xfa   : > { %v1036_v16 = vmax.f32 %v1004_v8, 0.0  ;;  %v1052_v17 = vmax.f32 %v1020_v9, 0.0  ;;  %v966_v18 = vmul.f32 %v1602_v10, %v1952_v51  ;;  %v982_v19 = vmul.f32 %v1650_v11, %v1952_v51 }
  0xfb   : > { %v1604_v20 = vpop.f32.mrf.mxu0  ;;  %v1652_v21 = vpop.f32.mrf.mxu1 }
  0xfc   : > { %v1486_v22 = vpack.c.bf16 %v1036_v16, %v1035_v14  ;;  %v1526_v23 = vpack.c.bf16 %v1052_v17, %v1051_v15  ;;  %v1605_v24 = vadd.f32 %v1604_v20, %v1603_v12  ;;  %v1653_v25 = vadd.f32 %v1652_v21, %v1651_v13 }
  0xfd   : > { %v1606_v26 = vpop.f32.mrf.mxu0  ;;  %v1654_v27 = vpop.f32.mrf.mxu1  ;;  %v1005_v28 = vadd.f32 %v1959_v59, %v966_v18  ;;  %v1021_v29 = vadd.f32 %v1959_v59, %v982_v19 }
  0xfe   : > { %1487 = vst [vmem:[%s1971_s15] sm:$0xff] %v1486_v22   ;;  %1570 = vst [vmem:[%s1971_s15 + $0x40] sm:$0xff] %v1526_v23   ;;  %v967_v30 = vmul.f32 %v1605_v24, %v1952_v51  ;;  %v983_v31 = vmul.f32 %v1653_v25, %v1952_v51 }
  0xff   : > { %v1607_v32 = vpop.f32.mrf.mxu0  ;;  %v1655_v33 = vpop.f32.mrf.mxu1  ;;  %v1037_v42 = vmax.f32 %v1005_v28, 0.0  ;;  %v1053_v43 = vmax.f32 %v1021_v29, 0.0 }
 0x100   : > { %v1608_v34 = vadd.f32 %v1607_v32, %v1606_v26  ;;  %v1656_v35 = vadd.f32 %v1655_v33, %v1654_v27  ;;  %v1006_v36 = vadd.f32 %v1959_v59, %v967_v30  ;;  %v1022_v37 = vadd.f32 %v1959_v59, %v983_v31 }
 0x101   : > { %v1609_v38 = vpop.f32.mrf.mxu0  ;;  %v1657_v39 = vpop.f32.mrf.mxu1 }
 0x102   : > { %v968_v40 = vmul.f32 %v1608_v34, %v1952_v51  ;;  %v984_v41 = vmul.f32 %v1656_v35, %v1952_v51  ;;  %v1038_v44 = vmax.f32 %v1006_v36, 0.0  ;;  %v1054_v45 = vmax.f32 %v1022_v37, 0.0 }
 0x103   : > { %v1610_v46 = vpop.f32.mrf.mxu0  ;;  %v1658_v47 = vpop.f32.mrf.mxu1 }
 0x104   : > { %v1611_v48 = vadd.f32 %v1610_v46, %v1609_v38  ;;  %v1659_v49 = vadd.f32 %v1658_v47, %v1657_v39  ;;  %v1491_v50 = vpack.c.bf16 %v1038_v44, %v1037_v42  ;;  %v1531_v52 = vpack.c.bf16 %v1054_v45, %v1053_v43 }
 0x105   : > { %v1612_v53 = vpop.f32.mrf.mxu0  ;;  %v1660_v54 = vpop.f32.mrf.mxu1  ;;  %v1007_v55 = vadd.f32 %v1959_v59, %v968_v40  ;;  %v1023_v56 = vadd.f32 %v1959_v59, %v984_v41 }
 0x106   : > { %v969_v57 = vmul.f32 %v1611_v48, %v1952_v51  ;;  %v985_v58 = vmul.f32 %v1659_v49, %v1952_v51  ;;  %1563 = vst [vmem:[%s1971_s15 + $0x8] sm:$0xff] %v1491_v50   ;;  %1571 = vst [vmem:[%s1971_s15 + $0x48] sm:$0xff] %v1531_v52  }
 0x107   : > { %v1613_v60 = vpop.f32.mrf.mxu0  ;;  %v1661_v61 = vpop.f32.mrf.mxu1  ;;  %v1039_v4 = vmax.f32 %v1007_v55, 0.0  ;;  %v1055_v5 = vmax.f32 %v1023_v56, 0.0 }
 0x108   : > { %v1008_v62 = vadd.f32 %v1959_v59, %v969_v57  ;;  %v1024_v63 = vadd.f32 %v1959_v59, %v985_v58  ;;  %v1614_v0 = vadd.f32 %v1613_v60, %v1612_v53  ;;  %v1662_v1 = vadd.f32 %v1661_v61, %v1660_v54 }
 0x109   : > { %v1615_v2 = vpop.f32.mrf.mxu0  ;;  %v1663_v3 = vpop.f32.mrf.mxu1 }
 0x10a   : > { %v1040_v6 = vmax.f32 %v1008_v62, 0.0  ;;  %v1056_v7 = vmax.f32 %v1024_v63, 0.0  ;;  %v970_v8 = vmul.f32 %v1614_v0, %v1952_v51  ;;  %v986_v9 = vmul.f32 %v1662_v1, %v1952_v51 }
 0x10b   : > { %v1616_v10 = vpop.f32.mrf.mxu0  ;;  %v1664_v11 = vpop.f32.mrf.mxu1 }
 0x10c   : > { %v1496_v12 = vpack.c.bf16 %v1040_v6, %v1039_v4  ;;  %v1536_v13 = vpack.c.bf16 %v1056_v7, %v1055_v5  ;;  %v1617_v14 = vadd.f32 %v1616_v10, %v1615_v2  ;;  %v1665_v15 = vadd.f32 %v1664_v11, %v1663_v3 }
 0x10d   : > { %v1618_v16 = vpop.f32.mrf.mxu0  ;;  %v1666_v17 = vpop.f32.mrf.mxu1  ;;  %v1009_v18 = vadd.f32 %v1959_v59, %v970_v8  ;;  %v1025_v19 = vadd.f32 %v1959_v59, %v986_v9 }
 0x10e   : > { %1564 = vst [vmem:[%s1971_s15 + $0x10] sm:$0xff] %v1496_v12   ;;  %1572 = vst [vmem:[%s1971_s15 + $0x50] sm:$0xff] %v1536_v13   ;;  %v971_v20 = vmul.f32 %v1617_v14, %v1952_v51  ;;  %v987_v21 = vmul.f32 %v1665_v15, %v1952_v51 }
 0x10f   : > { %v1619_v22 = vpop.f32.mrf.mxu0  ;;  %v1667_v23 = vpop.f32.mrf.mxu1  ;;  %v1041_v32 = vmax.f32 %v1009_v18, 0.0  ;;  %v1057_v33 = vmax.f32 %v1025_v19, 0.0 }
 0x110   : > { %v1620_v24 = vadd.f32 %v1619_v22, %v1618_v16  ;;  %v1668_v25 = vadd.f32 %v1667_v23, %v1666_v17  ;;  %v1010_v26 = vadd.f32 %v1959_v59, %v971_v20  ;;  %v1026_v27 = vadd.f32 %v1959_v59, %v987_v21 }
 0x111   : > { %v1621_v28 = vpop.f32.mrf.mxu0  ;;  %v1669_v29 = vpop.f32.mrf.mxu1 }
 0x112   : > { %v972_v30 = vmul.f32 %v1620_v24, %v1952_v51  ;;  %v988_v31 = vmul.f32 %v1668_v25, %v1952_v51  ;;  %v1042_v34 = vmax.f32 %v1010_v26, 0.0  ;;  %v1058_v35 = vmax.f32 %v1026_v27, 0.0 }
 0x113   : > { %v1622_v36 = vpop.f32.mrf.mxu0  ;;  %v1670_v37 = vpop.f32.mrf.mxu1 }
 0x114   : > { %v1623_v38 = vadd.f32 %v1622_v36, %v1621_v28  ;;  %v1671_v39 = vadd.f32 %v1670_v37, %v1669_v29  ;;  %v1501_v40 = vpack.c.bf16 %v1042_v34, %v1041_v32  ;;  %v1541_v41 = vpack.c.bf16 %v1058_v35, %v1057_v33 }
 0x115   : > { %v1624_v42 = vpop.f32.mrf.mxu0  ;;  %v1672_v43 = vpop.f32.mrf.mxu1  ;;  %v1011_v44 = vadd.f32 %v1959_v59, %v972_v30  ;;  %v1027_v45 = vadd.f32 %v1959_v59, %v988_v31 }
 0x116   : > { %v973_v46 = vmul.f32 %v1623_v38, %v1952_v51  ;;  %v989_v47 = vmul.f32 %v1671_v39, %v1952_v51  ;;  %1565 = vst [vmem:[%s1971_s15 + $0x18] sm:$0xff] %v1501_v40   ;;  %1573 = vst [vmem:[%s1971_s15 + $0x58] sm:$0xff] %v1541_v41  }
 0x117   : > { %v1625_v48 = vpop.f32.mrf.mxu0  ;;  %v1673_v49 = vpop.f32.mrf.mxu1  ;;  %v1043_v57 = vmax.f32 %v1011_v44, 0.0  ;;  %v1059_v58 = vmax.f32 %v1027_v45, 0.0 }
 0x118   : > { %v1012_v50 = vadd.f32 %v1959_v59, %v973_v46  ;;  %v1028_v52 = vadd.f32 %v1959_v59, %v989_v47  ;;  %v1626_v53 = vadd.f32 %v1625_v48, %v1624_v42  ;;  %v1674_v54 = vadd.f32 %v1673_v49, %v1672_v43 }
 0x119   : > { %v1627_v55 = vpop.f32.mrf.mxu0  ;;  %v1675_v56 = vpop.f32.mrf.mxu1 }
 0x11a   : > { %v1044_v60 = vmax.f32 %v1012_v50, 0.0  ;;  %v1060_v61 = vmax.f32 %v1028_v52, 0.0  ;;  %v974_v62 = vmul.f32 %v1626_v53, %v1952_v51  ;;  %v990_v63 = vmul.f32 %v1674_v54, %v1952_v51 }
 0x11b   : > { %v1628_v0 = vpop.f32.mrf.mxu0  ;;  %v1676_v1 = vpop.f32.mrf.mxu1 }
 0x11c   : > { %v1506_v2 = vpack.c.bf16 %v1044_v60, %v1043_v57  ;;  %v1546_v3 = vpack.c.bf16 %v1060_v61, %v1059_v58  ;;  %v1629_v4 = vadd.f32 %v1628_v0, %v1627_v55  ;;  %v1677_v5 = vadd.f32 %v1676_v1, %v1675_v56 }
 0x11d   : > { %v1630_v6 = vpop.f32.mrf.mxu0  ;;  %v1678_v7 = vpop.f32.mrf.mxu1  ;;  %v1013_v8 = vadd.f32 %v1959_v59, %v974_v62  ;;  %v1029_v9 = vadd.f32 %v1959_v59, %v990_v63 }
 0x11e   : > { %1566 = vst [vmem:[%s1971_s15 + $0x20] sm:$0xff] %v1506_v2   ;;  %1574 = vst [vmem:[%s1971_s15 + $0x60] sm:$0xff] %v1546_v3   ;;  %v975_v10 = vmul.f32 %v1629_v4, %v1952_v51  ;;  %v991_v11 = vmul.f32 %v1677_v5, %v1952_v51 }
 0x11f   : > { %v1631_v12 = vpop.f32.mrf.mxu0  ;;  %v1679_v13 = vpop.f32.mrf.mxu1  ;;  %v1045_v22 = vmax.f32 %v1013_v8, 0.0  ;;  %v1061_v23 = vmax.f32 %v1029_v9, 0.0 }
 0x120   : > { %v1632_v14 = vadd.f32 %v1631_v12, %v1630_v6  ;;  %v1680_v15 = vadd.f32 %v1679_v13, %v1678_v7  ;;  %v1014_v16 = vadd.f32 %v1959_v59, %v975_v10  ;;  %v1030_v17 = vadd.f32 %v1959_v59, %v991_v11 }
 0x121   : > { %v1633_v18 = vpop.f32.mrf.mxu0  ;;  %v1681_v19 = vpop.f32.mrf.mxu1 }
 0x122   : > { %v976_v20 = vmul.f32 %v1632_v14, %v1952_v51  ;;  %v992_v21 = vmul.f32 %v1680_v15, %v1952_v51  ;;  %v1046_v24 = vmax.f32 %v1014_v16, 0.0  ;;  %v1062_v25 = vmax.f32 %v1030_v17, 0.0 }
 0x123   : > { %v1634_v26 = vpop.f32.mrf.mxu0  ;;  %v1682_v27 = vpop.f32.mrf.mxu1 }
 0x124   : > { %v1635_v28 = vadd.f32 %v1634_v26, %v1633_v18  ;;  %v1683_v29 = vadd.f32 %v1682_v27, %v1681_v19  ;;  %v1511_v30 = vpack.c.bf16 %v1046_v24, %v1045_v22  ;;  %v1551_v31 = vpack.c.bf16 %v1062_v25, %v1061_v23 }
 0x125   : > { %v1636_v32 = vpop.f32.mrf.mxu0  ;;  %v1684_v33 = vpop.f32.mrf.mxu1  ;;  %v1015_v34 = vadd.f32 %v1959_v59, %v976_v20  ;;  %v1031_v35 = vadd.f32 %v1959_v59, %v992_v21 }
 0x126   : > { %v977_v36 = vmul.f32 %v1635_v28, %v1952_v51  ;;  %v993_v37 = vmul.f32 %v1683_v29, %v1952_v51  ;;  %1567 = vst [vmem:[%s1971_s15 + $0x28] sm:$0xff] %v1511_v30   ;;  %1575 = vst [vmem:[%s1971_s15 + $0x68] sm:$0xff] %v1551_v31  }
 0x127   : > { %v1637_v38 = vpop.f32.mrf.mxu0  ;;  %v1685_v39 = vpop.f32.mrf.mxu1  ;;  %v1047_v46 = vmax.f32 %v1015_v34, 0.0  ;;  %v1063_v47 = vmax.f32 %v1031_v35, 0.0 }
 0x128   : > { %v1016_v40 = vadd.f32 %v1959_v59, %v977_v36  ;;  %v1032_v41 = vadd.f32 %v1959_v59, %v993_v37  ;;  %v1638_v42 = vadd.f32 %v1637_v38, %v1636_v32  ;;  %v1686_v43 = vadd.f32 %v1685_v39, %v1684_v33 }
 0x129   : > { %v1639_v44 = vpop.f32.mrf.mxu0  ;;  %v1687_v45 = vpop.f32.mrf.mxu1 }
 0x12a   : > { %v1048_v48 = vmax.f32 %v1016_v40, 0.0  ;;  %v1064_v49 = vmax.f32 %v1032_v41, 0.0  ;;  %v978_v50 = vmul.f32 %v1638_v42, %v1952_v51  ;;  %v994_v52 = vmul.f32 %v1686_v43, %v1952_v51 }
 0x12b   : > { %v1640_v53 = vpop.f32.mrf.mxu0  ;;  %v1688_v54 = vpop.f32.mrf.mxu1 }
 0x12c   : > { %v1516_v55 = vpack.c.bf16 %v1048_v48, %v1047_v46  ;;  %v1556_v56 = vpack.c.bf16 %v1064_v49, %v1063_v47  ;;  %v1641_v57 = vadd.f32 %v1640_v53, %v1639_v44  ;;  %v1689_v58 = vadd.f32 %v1688_v54, %v1687_v45 }
 0x12d   : > { %v1017_v60 = vadd.f32 %v1959_v59, %v978_v50  ;;  %v1033_v61 = vadd.f32 %v1959_v59, %v994_v52 }
 0x12e   : > { %1568 = vst [vmem:[%s1971_s15 + $0x30] sm:$0xff] %v1516_v55   ;;  %1576 = vst [vmem:[%s1971_s15 + $0x70] sm:$0xff] %v1556_v56   ;;  %v979_v62 = vmul.f32 %v1641_v57, %v1952_v51  ;;  %v995_v63 = vmul.f32 %v1689_v58, %v1952_v51 }
 0x12f   : > { %v1049_v2 = vmax.f32 %v1017_v60, 0.0  ;;  %v1065_v3 = vmax.f32 %v1033_v61, 0.0 }
 0x130   : > { %v1018_v0 = vadd.f32 %v1959_v59, %v979_v62  ;;  %v1034_v1 = vadd.f32 %v1959_v59, %v995_v63 }
 0x132   : > { %v1050_v4 = vmax.f32 %v1018_v0, 0.0  ;;  %v1066_v5 = vmax.f32 %v1034_v1, 0.0 }
 0x134   : > { %v1521_v6 = vpack.c.bf16 %v1050_v4, %v1049_v2  ;;  %v1561_v7 = vpack.c.bf16 %v1066_v5, %v1065_v3 }
 0x136   : > { %1569 = vst [vmem:[%s1971_s15 + $0x38] sm:$0xff] %v1521_v6   ;;  %1577 = vst [vmem:[%s1971_s15 + $0x78] sm:$0xff] %v1561_v7  }
 0x137 PF: > { %s14_s17 = sadd.s32 1, %s1816_s17   ;;  %s2059_s15 = smov %s1812_s16 }
 0x138   : > { %p11_p5 = scmp.ge.s32.totalorder %s14_s17, 4   ;;  %s2060_s16 = smov %s2062_s18 }
 0x13a   :  { %13 = sbr.rel (!%p11_p5) target bundleno = 2 (0x2), region = 83 }

</bundles_post_ra>
